<compile_context>
chip_gen: v6e
topology: v6e:2x2x1
jax: 0.10.0
libtpu: 0.0.40
codegen_flags: <defaults>
</compile_context>

<pallas_src>
import jax
import jax.numpy as jnp
from jax.experimental import pallas as pl
from jax.experimental.pallas import tpu as pltpu

_LANE = 128          # lane-dense padded fc2 output width
_OUT_DIM = 2         # real fc2 output width


def _mlp_c_kernel(x1_ref, x2_ref, w1a_ref, w1b_ref, b1_ref, w2_ref, b2_ref, o_ref):
    # Everything tiny; whole arrays live in VMEM, single invocation, no grid.
    # MXU operands in bf16, accumulation in f32.
    x1 = x1_ref[...].astype(jnp.bfloat16)          # (B, d1)
    x2 = x2_ref[...].astype(jnp.bfloat16)          # (B, d2)

    # fc1 with the torch `cat` fused and the weight PRE-split at the d1
    # boundary (whole-tile loads, no in-kernel re-layout):
    #   cat(X1, X2) @ W1 == X1 @ W1a + X2 @ W1b
    h = jnp.dot(x1, w1a_ref[...], preferred_element_type=jnp.float32)
    h = h + jnp.dot(x2, w1b_ref[...], preferred_element_type=jnp.float32)
    h = h + b1_ref[...]                            # (1, fil_num) broadcast, f32

    # LeakyReLU (torch default negative_slope = 0.01), kept in f32 (v5e guard).
    h = jnp.where(h > 0, h, 0.01 * h)

    # fc2: lane-dense padded to 128 output columns (unmasked full-vreg store).
    out = jnp.dot(h.astype(jnp.bfloat16), w2_ref[...],
                  preferred_element_type=jnp.float32)
    out = out + b2_ref[...]                        # (1, 128) broadcast, f32
    o_ref[...] = out.astype(o_ref.dtype)


def prepare_params(w1, b1, w2, b2, d1):
    """One-time setup.

    - split fc1 weight at the X1/X2 boundary (avoids non-sublane-aligned
      in-kernel slicing),
    - cast matmul weights to bf16 (MXU-native passes), biases stay f32,
    - zero-pad fc2 weight/bias columns to 128 so the output store is
      lane-dense; the wrapper slices the real 2 columns back out.
    """
    fil_num = w1.shape[1]
    out_dim = w2.shape[1]

    w1a = w1[:d1].astype(jnp.bfloat16)                         # (d1, fil_num)
    w1b = w1[d1:].astype(jnp.bfloat16)                         # (d2, fil_num)
    b1r = b1.reshape(1, fil_num).astype(jnp.float32)           # (1, fil_num)

    w2p = jnp.zeros((fil_num, _LANE), jnp.float32)
    w2p = w2p.at[:, :out_dim].set(w2).astype(jnp.bfloat16)     # (fil_num, 128)
    b2p = jnp.zeros((1, _LANE), jnp.float32).at[0, :out_dim].set(b2)

    return w1a, w1b, b1r, w2p, b2p


def mlp_c_forward(x1, x2, params, out_dim=_OUT_DIM):
    """_MLP_C forward (eval mode). x1: (B, d1), x2: (B, d2); params from
    prepare_params(). Returns (B, out_dim) f32 logits."""
    w1a, w1b, b1r, w2p, b2p = params
    b, d1 = x1.shape
    d2 = x2.shape[1]
    in_size = d1 + d2
    fil_num = w1a.shape[1]
    n_pad = w2p.shape[1]

    flops = 2 * b * (in_size * fil_num + fil_num * n_pad)
    bytes_accessed = (4 * b * (in_size + n_pad)
                      + 2 * (in_size * fil_num + fil_num * n_pad)
                      + 4 * (fil_num + n_pad))

    out_padded = pl.pallas_call(
        _mlp_c_kernel,
        out_shape=jax.ShapeDtypeStruct((b, n_pad), jnp.float32),
        # No grid: single invocation, whole arrays placed in VMEM.
        in_specs=[
            pl.BlockSpec(memory_space=pltpu.MemorySpace.VMEM),   # x1
            pl.BlockSpec(memory_space=pltpu.MemorySpace.VMEM),   # x2
            pl.BlockSpec(memory_space=pltpu.MemorySpace.VMEM),   # w1a
            pl.BlockSpec(memory_space=pltpu.MemorySpace.VMEM),   # w1b
            pl.BlockSpec(memory_space=pltpu.MemorySpace.VMEM),   # b1
            pl.BlockSpec(memory_space=pltpu.MemorySpace.VMEM),   # w2 (padded)
            pl.BlockSpec(memory_space=pltpu.MemorySpace.VMEM),   # b2 (padded)
        ],
        out_specs=pl.BlockSpec(memory_space=pltpu.MemorySpace.VMEM),
        cost_estimate=pl.CostEstimate(
            flops=flops, transcendentals=0, bytes_accessed=bytes_accessed),
    )(x1, x2, w1a, w1b, b1r, w2p, b2p)

    return out_padded[:, :out_dim]          # XLA folds the slice


def init_params(key, in_size, fil_num, out_dim=_OUT_DIM):
    """Deterministic init matching torch.nn.Linear's U(-1/sqrt(fan_in), ...)."""
    k1, k2, k3, k4 = jax.random.split(key, 4)
    lim1 = 1.0 / (in_size ** 0.5)
    lim2 = 1.0 / (fil_num ** 0.5)
    # Stored transposed relative to torch: (in_features, out_features).
    w1 = jax.random.uniform(k1, (in_size, fil_num), jnp.float32, -lim1, lim1)
    b1 = jax.random.uniform(k2, (fil_num,), jnp.float32, -lim1, lim1)
    w2 = jax.random.uniform(k3, (fil_num, out_dim), jnp.float32, -lim2, lim2)
    b2 = jax.random.uniform(k4, (out_dim,), jnp.float32, -lim2, lim2)
    return w1, b1, w2, b2


if __name__ == "__main__":
    key = jax.random.PRNGKey(0)
    kx1, kx2, kp = jax.random.split(key, 3)

    # X1 = DPM features from FCN, X2 = age/gender/MMSE covariates.
    # B=128 rows in one call: amortizes the fixed launch/DMA cost and fills
    # the MXU rows on v5e (single pass on v6e/v7x) — still a tiny problem.
    B, D1, D2 = 128, 28, 4        # in_size = 32
    FIL_NUM = 32

    x1 = jax.random.normal(kx1, (B, D1), jnp.float32)
    x2 = jax.random.normal(kx2, (B, D2), jnp.float32)
    w1, b1, w2, b2 = init_params(kp, D1 + D2, FIL_NUM)
    params = prepare_params(w1, b1, w2, b2, D1)     # one-time split/pad/bf16 cast

    out = mlp_c_forward(x1, x2, params)
    out = jax.block_until_ready(out)

    # Pure-JAX f32 reference (matches the torch module in eval mode).
    x = jnp.concatenate([x1, x2], axis=1)
    h = x @ w1 + b1
    h = jnp.where(h > 0, h, 0.01 * h)
    ref = h @ w2 + b2

    assert out.shape == (B, _OUT_DIM)
    # Tolerance loosened vs. the f32 version: kernel uses bf16 MXU operands
    # with f32 accumulation (review opt #3).
    assert jnp.allclose(out, ref, atol=3e-2, rtol=3e-2), \
        float(jnp.max(jnp.abs(out - ref)))

    print("KERNEL_OK")
</pallas_src>

<mosaic_0001>
module attributes {stable_mosaic.version = 11 : i64} {
  func.func @_mlp_c_kernel(%arg0: memref<128x28xf32, #tpu.memory_space<vmem>>, %arg1: memref<128x4xf32, #tpu.memory_space<vmem>>, %arg2: memref<28x32xbf16, #tpu.memory_space<vmem>>, %arg3: memref<4x32xbf16, #tpu.memory_space<vmem>>, %arg4: memref<1x32xf32, #tpu.memory_space<vmem>>, %arg5: memref<32x128xbf16, #tpu.memory_space<vmem>>, %arg6: memref<1x128xf32, #tpu.memory_space<vmem>>, %arg7: memref<128x128xf32, #tpu.memory_space<vmem>>) attributes {dimension_semantics = [], scalar_prefetch = 0 : i64, scratch_operands = 0 : i64, tpu.core_type = #tpu.core_type<tc>} {
    %c0 = arith.constant 0 : index
    %c0_0 = arith.constant 0 : index
    %0 = vector.load %arg0[%c0, %c0_0] : memref<128x28xf32, #tpu.memory_space<vmem>>, vector<128x28xf32>
    %1 = arith.truncf %0 : vector<128x28xf32> to vector<128x28xbf16>
    %c0_1 = arith.constant 0 : index
    %c0_2 = arith.constant 0 : index
    %2 = vector.load %arg1[%c0_1, %c0_2] : memref<128x4xf32, #tpu.memory_space<vmem>>, vector<128x4xf32>
    %3 = arith.truncf %2 : vector<128x4xf32> to vector<128x4xbf16>
    %c0_3 = arith.constant 0 : index
    %c0_4 = arith.constant 0 : index
    %4 = vector.load %arg2[%c0_3, %c0_4] : memref<28x32xbf16, #tpu.memory_space<vmem>>, vector<28x32xbf16>
    %cst = arith.constant dense<0.000000e+00> : vector<128x32xf32>
    %5 = tpu.matmul %1, %4, %cst {dimension_numbers = #tpu.dot_dimension_numbers<[1], [0], [0], [1], [0, 0, 1, 1], [], []>} : vector<128x28xbf16>, vector<28x32xbf16>, vector<128x32xf32> -> vector<128x32xf32>
    %c0_5 = arith.constant 0 : index
    %c0_6 = arith.constant 0 : index
    %6 = vector.load %arg3[%c0_5, %c0_6] : memref<4x32xbf16, #tpu.memory_space<vmem>>, vector<4x32xbf16>
    %cst_7 = arith.constant dense<0.000000e+00> : vector<128x32xf32>
    %7 = tpu.matmul %3, %6, %cst_7 {dimension_numbers = #tpu.dot_dimension_numbers<[1], [0], [0], [1], [0, 0, 1, 1], [], []>} : vector<128x4xbf16>, vector<4x32xbf16>, vector<128x32xf32> -> vector<128x32xf32>
    %8 = arith.addf %5, %7 : vector<128x32xf32>
    %c0_8 = arith.constant 0 : index
    %c0_9 = arith.constant 0 : index
    %9 = vector.load %arg4[%c0_8, %c0_9] : memref<1x32xf32, #tpu.memory_space<vmem>>, vector<1x32xf32>
    %10 = vector.broadcast %9 : vector<1x32xf32> to vector<128x32xf32>
    %11 = arith.addf %8, %10 : vector<128x32xf32>
    %cst_10 = arith.constant 0.000000e+00 : f32
    %12 = vector.broadcast %cst_10 : f32 to vector<128x32xf32>
    %13 = arith.cmpf ogt, %11, %12 : vector<128x32xf32>
    %cst_11 = arith.constant 0.00999999977 : f32
    %14 = vector.broadcast %cst_11 : f32 to vector<128x32xf32>
    %15 = arith.mulf %14, %11 : vector<128x32xf32>
    %16 = arith.select %13, %11, %15 : vector<128x32xi1>, vector<128x32xf32>
    %17 = arith.truncf %16 : vector<128x32xf32> to vector<128x32xbf16>
    %c0_12 = arith.constant 0 : index
    %c0_13 = arith.constant 0 : index
    %18 = vector.load %arg5[%c0_12, %c0_13] : memref<32x128xbf16, #tpu.memory_space<vmem>>, vector<32x128xbf16>
    %cst_14 = arith.constant dense<0.000000e+00> : vector<128x128xf32>
    %19 = tpu.matmul %17, %18, %cst_14 {dimension_numbers = #tpu.dot_dimension_numbers<[1], [0], [0], [1], [0, 0, 1, 1], [], []>} : vector<128x32xbf16>, vector<32x128xbf16>, vector<128x128xf32> -> vector<128x128xf32>
    %c0_15 = arith.constant 0 : index
    %c0_16 = arith.constant 0 : index
    %20 = vector.load %arg6[%c0_15, %c0_16] : memref<1x128xf32, #tpu.memory_space<vmem>>, vector<1x128xf32>
    %21 = vector.broadcast %20 : vector<1x128xf32> to vector<128x128xf32>
    %22 = arith.addf %19, %21 : vector<128x128xf32>
    %c0_17 = arith.constant 0 : index
    %c0_18 = arith.constant 0 : index
    %23 = vector.load %arg7[%c0_17, %c0_18] : memref<128x128xf32, #tpu.memory_space<vmem>>, vector<128x128xf32>
    tpu.vector_store %arg7[%c0_17, %c0_18], %22 {strides = array<i32>} : memref<128x128xf32, #tpu.memory_space<vmem>>, vector<128x128xf32>,
    return
  }
}

</mosaic_0001>

<bundles_post_ra>
// kernel: tpu_custom_call.1
= control target key start
LH: loop header
LB: loop body
LE: loop exit
PB: predicated region body
PF: predicated region fallthrough
CT: control target
= control target key end

     0   :  { %vm106_vm0 = vcmask 1041408   ;;  %vm81_vm1 = vcmask 31744   ;;  %vm243_vm2 = vcmask 1045504   ;;  %vm218_vm3 = vcmask 228352   ;;  %s977_s0 = inlined_call_operand.vmem [shape: f32[128,28], index: 0, kind: input, shape index: {}]   ;;  %s978_s1 = inlined_call_operand.vmem [shape: f32[128,4], index: 1, kind: input, shape index: {}]   ;;  %s979_s2 = inlined_call_operand.vmem [shape: bf16[28,32], index: 2, kind: input, shape index: {}]   ;;  %s980_s3 = inlined_call_operand.vmem [shape: bf16[4,32], index: 3, kind: input, shape index: {}]   ;;  %s981_s4 = inlined_call_operand.vmem [shape: f32[1,32], index: 4, kind: input, shape index: {}]   ;;  %s982_s5 = inlined_call_operand.vmem [shape: bf16[32,128], index: 5, kind: input, shape index: {}]   ;;  %s983_s6 = inlined_call_operand.vmem [shape: f32[1,128], index: 6, kind: input, shape index: {}]   ;;  %s984_s7 = inlined_call_operand.hbm [shape: f32[128,128], index: 7, kind: output, shape index: {}]  }
   0x1   :  { %v80_v0 = vld [vmem:[%s980_s3] sm:$0x3]  ;;  %v61_v2 = vld [vmem:[%s978_s1 + $0x48] sm:$0xff]  ;;  %v62_v5 = vld [vmem:[%s978_s1 + $0x50] sm:$0xff] }
   0x2   :  { %v60_v1 = vld [vmem:[%s978_s1 + $0x40] sm:$0xff]  ;;  %720 = vmatprep.subr.msk.bf16.mxu1 %vm106_vm0, %v80_v0  ;;  %v108_v3 = vsel %vm106_vm0, %v80_v0, 0  ;;  %v63_v6 = vld [vmem:[%s978_s1 + $0x58] sm:$0xff]  ;;  %719 = vmatprep.subr.msk.bf16.mxu0 %vm106_vm0, %v80_v0  ;;  %v725_v8 = vld [vmem:[%s979_s2 + $0x8] sm:$0x3f]  }
   0x3   :  { %v72_v4 = vpack.c.bf16 %v61_v2, %v60_v1  ;;  %718 = vmatpush3.bf16.msra.mxu1 %v108_v3  ;;  %v73_v7 = vpack.c.bf16 %v63_v6, %v62_v5  ;;  %v64_v9 = vld [vmem:[%s978_s1 + $0x60] sm:$0xff]  ;;  %660 = vmatpush3.bf16.msra.mxu0 %v108_v3  ;;  %v65_v10 = vld [vmem:[%s978_s1 + $0x68] sm:$0xff]  ;;  %v245_v11 = vsel %vm243_vm2, %v725_v8, 0  ;;  %v54_v16 = vld [vmem:[%s978_s1 + $0x10] sm:$0xff] }
   0x4   :  { %721 = vmatprep.subr.msk.bf16.mxu1 %vm243_vm2, %v725_v8  ;;  %v74_v12 = vpack.c.bf16 %v65_v10, %v64_v9  ;;  %v726_v13 = vld [vmem:[%s979_s2] sm:$0xff]   ;;  %v53_v15 = vld [vmem:[%s978_s1 + $0x8] sm:$0xff]  ;;  %v66_v17 = vld [vmem:[%s978_s1 + $0x70] sm:$0xff] }
   0x5   :  { %669 = vmatprep.mubr.msk.bf16.mxu1 %vm81_vm1, %v72_v4  ;;  %v52_v14 = vld [vmem:[%s978_s1] sm:$0xff]  ;;  %v67_v18 = vld [vmem:[%s978_s1 + $0x78] sm:$0xff]  ;;  %v29_v23 = vld [vmem:[%s977_s0 + $0x8] sm:$0xff] }
   0x6   :  { %670 = vmatmul.mubr.msk.bf16.vlgmr.msra.gmra.mxu1 %vm81_vm1, %v73_v7  ;;  %v68_v19 = vpack.c.bf16 %v53_v15, %v52_v14  ;;  %v55_v20 = vld [vmem:[%s978_s1 + $0x18] sm:$0xff]  ;;  %v28_v22 = vld [vmem:[%s977_s0] sm:$0xff]  ;;  %v57_v25 = vld [vmem:[%s978_s1 + $0x28] sm:$0xff]  ;;  %v75_v26 = vpack.c.bf16 %v67_v18, %v66_v17 }
   0x7   :  { %678 = vmatpush3.bf16.msra.mxu1 %v245_v11  ;;  %673 = vmatprep.mubr.msk.bf16.mxu1 %vm81_vm1, %v74_v12  ;;  %v69_v21 = vpack.c.bf16 %v55_v20, %v54_v16  ;;  %v56_v24 = vld [vmem:[%s978_s1 + $0x20] sm:$0xff]  ;;  %v44_v28 = vpack.c.bf16 %v29_v23, %v28_v22  ;;  %v58_v29 = vld [vmem:[%s978_s1 + $0x30] sm:$0xff]  ;;  %v59_v30 = vld [vmem:[%s978_s1 + $0x38] sm:$0xff] }
   0x8   :  { %679 = vmatprep.subr.bf16.mxu1 %v726_v13  ;;  %661 = vmatprep.mubr.msk.bf16.mxu0 %vm81_vm1, %v68_v19  ;;  %v70_v27 = vpack.c.bf16 %v57_v25, %v56_v24  ;;  %v30_v31 = vld [vmem:[%s977_s0 + $0x10] sm:$0xff]  ;;  %v71_v32 = vpack.c.bf16 %v59_v30, %v58_v29  ;;  %v31_v33 = vld [vmem:[%s977_s0 + $0x18] sm:$0xff] }
   0x9   :  { %662 = vmatmul.mubr.msk.bf16.vlgmr.msra.gmra.mxu0 %vm81_vm1, %v69_v21 }
   0xa   :  { %665 = vmatprep.mubr.msk.bf16.mxu0 %vm81_vm1, %v70_v27 }
   0xb   :  { %680 = vmatpush3.bf16.msra.mxu1 %v726_v13 }
   0xe   :  { %674 = vmatmul.mubr.msk.bf16.gmra.mxu1 %vm81_vm1, %v75_v26 }
   0xf   :  { %681 = vmatprep.mubr.msk.bf16.mxu1 %vm218_vm3, %v44_v28 }
  0x10   :  { %12 = vsyncpa [#allocation3], 0  ;;  %v32_v34 = vld [vmem:[%s977_s0 + $0x20] sm:$0xff]  ;;  %v33_v35 = vld [vmem:[%s977_s0 + $0x28] sm:$0xff]  ;;  %v45_v36 = vpack.c.bf16 %v31_v33, %v30_v31  ;;  %vm446_vm8 = vcmask 261120  }
  0x11   :  { %666 = vmatmul.mubr.msk.bf16.gmra.mxu0 %vm81_vm1, %v71_v32  ;;  %v46_v37 = vpack.c.bf16 %v33_v35, %v32_v34  ;;  %v34_v38 = vld [vmem:[%s977_s0 + $0x30] sm:$0xff]  ;;  %v35_v39 = vld [vmem:[%s977_s0 + $0x38] sm:$0xff]  ;;  %v36_v40 = vld [vmem:[%s977_s0 + $0x40] sm:$0xff] }
  0x12   :  { %v37_v41 = vld [vmem:[%s977_s0 + $0x48] sm:$0xff]  ;;  %v47_v42 = vpack.c.bf16 %v35_v39, %v34_v38  ;;  %v38_v44 = vld [vmem:[%s977_s0 + $0x50] sm:$0xff]  ;;  %v39_v45 = vld [vmem:[%s977_s0 + $0x58] sm:$0xff] }
  0x13   :  { %v48_v43 = vpack.c.bf16 %v37_v41, %v36_v40  ;;  %v40_v46 = vld [vmem:[%s977_s0 + $0x60] sm:$0xff]  ;;  %v41_v47 = vld [vmem:[%s977_s0 + $0x68] sm:$0xff]  ;;  %v49_v48 = vpack.c.bf16 %v39_v45, %v38_v44  ;;  %v42_v50 = vld [vmem:[%s977_s0 + $0x70] sm:$0xff] }
  0x14   :  { %v50_v49 = vpack.c.bf16 %v41_v47, %v40_v46  ;;  %v43_v51 = vld [vmem:[%s977_s0 + $0x78] sm:$0xff]  ;;  %v727_v53 = vld [vmem:[%s982_s5 + $0x8] sm:$0xff]   ;;  %v728_v54 = vld [vmem:[%s982_s5] sm:$0xff]  }
  0x15   :  { %v51_v52 = vpack.c.bf16 %v43_v51, %v42_v50  ;;  %697 = vmatprep.subr.bf16.mxu0 %v727_v53  ;;  %v938_v8 = vld [vmem:[%s981_s4] ss:$0 sm:$0xff] }
  0x16   :  { %682 = vmatmul.mubr.msk.bf16.vlgmr.msra.gmra.mxu1 %vm218_vm3, %v45_v36  ;;  %698 = vmatpush3.bf16.msra.mxu0 %v727_v53 }
  0x17   :  { %685 = vmatprep.mubr.msk.bf16.mxu1 %vm218_vm3, %v46_v37  ;;  %699 = vmatprep.subr.bf16.mxu0 %v728_v54 }
  0x1a   :  { %700 = vmatpush3.bf16.msra.mxu0 %v728_v54 }
  0x1e   :  { %686 = vmatmul.mubr.msk.bf16.gmra.mxu1 %vm218_vm3, %v47_v42 }
  0x1f   :  { %689 = vmatprep.mubr.msk.bf16.mxu1 %vm218_vm3, %v48_v43 }
  0x26   :  { %690 = vmatmul.mubr.msk.bf16.gmra.mxu1 %vm218_vm3, %v49_v48 }
  0x27   :  { %693 = vmatprep.mubr.msk.bf16.mxu1 %vm218_vm3, %v50_v49 }
  0x2e   :  { %694 = vmatmul.mubr.msk.bf16.gmra.mxu1 %vm218_vm3, %v51_v52 }
  0xc6   :  { %v671_v55 = vpop.f32.mrf.mxu1 }
  0xc8   :  { %v921_v56 = vpop.f32.mrf.mxu1 }
  0xc9   :  { %v663_v58 = vpop.f32.mrf.mxu0 }
  0xca   :  { %v923_v57 = vpop.f32.mrf.mxu1 }
  0xcb   :  { %v144_v60 = vpop.f32.mrf.mxu0 }
  0xcc   :  { %v925_v59 = vpop.f32.mrf.mxu1 }
  0xcd   :  { %v664_v63 = vpop.f32.mrf.mxu0 }
  0xce   :  { %v927_v61 = vpop.f32.mrf.mxu1 }
  0xcf   :  { %v147_v2 = vpop.f32.mrf.mxu0 }
  0xd0   :  { %v929_v62 = vpop.f32.mrf.mxu1 }
  0xd1   :  { %v667_v7 = vpop.f32.mrf.mxu0 }
  0xd2   :  { %v931_v0 = vpop.f32.mrf.mxu1 }
  0xd3   :  { %v160_v15 = vpop.f32.mrf.mxu0 }
  0xd4   :  { %v933_v1 = vpop.f32.mrf.mxu1 }
  0xd5   :  { %v668_v23 = vpop.f32.mrf.mxu0 }
  0xd6   :  { %v683_v3 = vpop.f32.mrf.mxu1 }
  0xd7   :  { %v290_v5 = vadd.f32 %v683_v3, %v663_v58  ;;  %v163_v33 = vpop.f32.mrf.mxu0 }
  0xd8   :  { %v281_v4 = vpop.f32.mrf.mxu1 }
  0xd9   :  { %v282_v6 = vadd.f32 %v281_v4, %v144_v60  ;;  %v353_v12 = vadd.f32 %v938_v8, %v290_v5 }
  0xda   :  { %v684_v9 = vpop.f32.mrf.mxu1 }
  0xdb   :  { %v293_v10 = vadd.f32 %v684_v9, %v664_v63  ;;  %v351_v13 = vadd.f32 %v938_v8, %v282_v6  ;;  %v385_v21 = vmul.f32 0.01, %v353_v12  ;;  %vm369_vm7 = vcmp.gt.f32.partialorder %v353_v12, 0.0 }
  0xdc   :  { %v284_v11 = vpop.f32.mrf.mxu1 }
  0xdd   :  { %v354_v14 = vadd.f32 %v938_v8, %v293_v10  ;;  %v285_v16 = vadd.f32 %v284_v11, %v147_v2  ;;  %v383_v22 = vmul.f32 0.01, %v351_v13  ;;  %vm367_vm5 = vcmp.gt.f32.partialorder %v351_v13, 0.0 }
  0xde   :  { %v687_v17 = vpop.f32.mrf.mxu1  ;;  %v401_v36 = vsel %vm369_vm7, %v353_v12, %v385_v21 }
  0xdf   :  { %v386_v18 = vmul.f32 0.01, %v354_v14  ;;  %v352_v19 = vadd.f32 %v938_v8, %v285_v16  ;;  %vm370_vm4 = vcmp.gt.f32.partialorder %v354_v14, 0.0  ;;  %v306_v26 = vadd.f32 %v687_v17, %v667_v7 }
  0xe0   :  { %v297_v20 = vpop.f32.mrf.mxu1  ;;  %v399_v32 = vsel %vm367_vm5, %v351_v13, %v383_v22 }
  0xe1   :  { %v298_v24 = vadd.f32 %v297_v20, %v160_v15  ;;  %vm368_vm6 = vcmp.gt.f32.partialorder %v352_v19, 0.0  ;;  %v384_v25 = vmul.f32 0.01, %v352_v19  ;;  %v402_v29 = vsel %vm370_vm4, %v354_v14, %v386_v18 }
  0xe2   :  { %v688_v27 = vpop.f32.mrf.mxu1  ;;  %v357_v37 = vadd.f32 %v938_v8, %v306_v26  ;;  %v416_v41 = vpack.c.bf16 %v402_v29, %v401_v36 }
  0xe3   :  { %v309_v28 = vadd.f32 %v688_v27, %v668_v23  ;;  %v400_v30 = vsel %vm368_vm6, %v352_v19, %v384_v25  ;;  %v355_v34 = vadd.f32 %v938_v8, %v298_v24 }
  0xe4   :  { %v300_v31 = vpop.f32.mrf.mxu1  ;;  %v415_v40 = vpack.c.bf16 %v400_v30, %v399_v32  ;;  %v389_v48 = vmul.f32 0.01, %v357_v37  ;;  %vm373_vm12 = vcmp.gt.f32.partialorder %v357_v37, 0.0 }
  0xe5   :  { %v358_v35 = vadd.f32 %v938_v8, %v309_v28  ;;  %v301_v38 = vadd.f32 %v300_v31, %v163_v33  ;;  %v387_v45 = vmul.f32 0.01, %v355_v34  ;;  %vm371_vm10 = vcmp.gt.f32.partialorder %v355_v34, 0.0 }
  0xe6   :  { %v691_v39 = vpop.f32.mrf.mxu1  ;;  %701 = vmatprep.mubr.msk.bf16.mxu0 %vm446_vm8, %v415_v40  ;;  %v405_v2 = vsel %vm373_vm12, %v357_v37, %v389_v48 }
  0xe7   :  { %v390_v42 = vmul.f32 0.01, %v358_v35  ;;  %v356_v43 = vadd.f32 %v938_v8, %v301_v38  ;;  %vm374_vm9 = vcmp.gt.f32.partialorder %v358_v35, 0.0  ;;  %v322_v46 = vadd.f32 %v691_v39, %v671_v55  ;;  %702 = vmatmul.mubr.msk.bf16.vlgmr.msra.gmra.mxu0 %vm446_vm8, %v416_v41 }
  0xe8   :  { %v313_v44 = vpop.f32.mrf.mxu1  ;;  %v403_v58 = vsel %vm371_vm10, %v355_v34, %v387_v45 }
  0xe9   :  { %v314_v47 = vadd.f32 %v313_v44, %v921_v56  ;;  %vm372_vm11 = vcmp.gt.f32.partialorder %v356_v43, 0.0  ;;  %v388_v49 = vmul.f32 0.01, %v356_v43  ;;  %v406_v52 = vsel %vm374_vm9, %v358_v35, %v390_v42 }
  0xea   :  { %v692_v50 = vpop.f32.mrf.mxu1  ;;  %v361_v60 = vadd.f32 %v938_v8, %v322_v46  ;;  %v418_v5 = vpack.c.bf16 %v406_v52, %v405_v2 }
  0xeb   :  { %v325_v51 = vadd.f32 %v692_v50, %v923_v57  ;;  %v404_v53 = vsel %vm372_vm11, %v356_v43, %v388_v49  ;;  %v359_v55 = vadd.f32 %v938_v8, %v314_v47 }
  0xec   :  { %v316_v54 = vpop.f32.mrf.mxu1  ;;  %v417_v4 = vpack.c.bf16 %v404_v53, %v403_v58  ;;  %v393_v9 = vmul.f32 0.01, %v361_v60  ;;  %vm377_vm0 = vcmp.gt.f32.partialorder %v361_v60, 0.0 }
  0xed   :  { %v362_v63 = vadd.f32 %v938_v8, %v325_v51  ;;  %v317_v56 = vadd.f32 %v316_v54, %v925_v59  ;;  %v391_v10 = vmul.f32 0.01, %v359_v55  ;;  %vm375_vm14 = vcmp.gt.f32.partialorder %v359_v55, 0.0 }
  0xee   :  { %v695_v3 = vpop.f32.mrf.mxu1  ;;  %705 = vmatprep.mubr.msk.bf16.mxu0 %vm446_vm8, %v417_v4  ;;  %v409_v21 = vsel %vm377_vm0, %v361_v60, %v393_v9 }
  0xef   :  { %v394_v6 = vmul.f32 0.01, %v362_v63  ;;  %v360_v7 = vadd.f32 %v938_v8, %v317_v56  ;;  %vm378_vm13 = vcmp.gt.f32.partialorder %v362_v63, 0.0  ;;  %706 = vmatmul.mubr.msk.bf16.gmra.mxu0 %vm446_vm8, %v418_v5  ;;  %v338_v59 = vadd.f32 %v695_v3, %v927_v61 }
  0xf0   :  { %v329_v57 = vpop.f32.mrf.mxu1  ;;  %v407_v19 = vsel %vm375_vm14, %v359_v55, %v391_v10 }
  0xf1   :  { %v330_v11 = vadd.f32 %v329_v57, %v929_v62  ;;  %vm376_vm15 = vcmp.gt.f32.partialorder %v360_v7, 0.0  ;;  %v392_v12 = vmul.f32 0.01, %v360_v7  ;;  %v410_v15 = vsel %vm378_vm13, %v362_v63, %v394_v6 }
  0xf2   :  { %v696_v13 = vpop.f32.mrf.mxu1  ;;  %v365_v62 = vadd.f32 %v938_v8, %v338_v59  ;;  %v420_v24 = vpack.c.bf16 %v410_v15, %v409_v21 }
  0xf3   :  { %v341_v14 = vadd.f32 %v696_v13, %v931_v0  ;;  %v408_v16 = vsel %vm376_vm15, %v360_v7, %v392_v12  ;;  %v363_v17 = vadd.f32 %v938_v8, %v330_v11 }
  0xf4   :  { %v332_v18 = vpop.f32.mrf.mxu1  ;;  %v419_v23 = vpack.c.bf16 %v408_v16, %v407_v19  ;;  %v397_v0 = vmul.f32 0.01, %v365_v62  ;;  %vm381_vm4 = vcmp.gt.f32.partialorder %v365_v62, 0.0 }
  0xf5   :  { %v366_v20 = vadd.f32 %v938_v8, %v341_v14  ;;  %v333_v22 = vadd.f32 %v332_v18, %v933_v1  ;;  %v395_v61 = vmul.f32 0.01, %v363_v17  ;;  %vm379_vm1 = vcmp.gt.f32.partialorder %v363_v17, 0.0 }
  0xf6   :  { %709 = vmatprep.mubr.msk.bf16.mxu0 %vm446_vm8, %v419_v23  ;;  %v413_v31 = vsel %vm381_vm4, %v365_v62, %v397_v0 }
  0xf7   :  { %v398_v25 = vmul.f32 0.01, %v366_v20  ;;  %v364_v26 = vadd.f32 %v938_v8, %v333_v22  ;;  %vm382_vm2 = vcmp.gt.f32.partialorder %v366_v20, 0.0  ;;  %710 = vmatmul.mubr.msk.bf16.gmra.mxu0 %vm446_vm8, %v420_v24  ;;  %v411_v28 = vsel %vm379_vm1, %v363_v17, %v395_v61  ;;  %v619_v8 = vld [vmem:[%s983_s6] ss:$0 sm:$0xff]  ;;  %s751_s6 = smov [#allocation2]  }
  0xf8   :  { %s589_s23 = sshll.u32 %s751_s6, 4  ;;  %s590_s23 = int_to_ptr.vmem [resolvable:$true] %s589_s23 }
  0xf9   :  { %vm380_vm3 = vcmp.gt.f32.partialorder %v364_v26, 0.0  ;;  %v396_v27 = vmul.f32 0.01, %v364_v26  ;;  %v414_v29 = vsel %vm382_vm2, %v366_v20, %v398_v25  ;;  %s729_s24 = scalar_lea.vmem %s590_s23, 2048  ;;  %p734_p1 = scmp.lt.s32.totalorder %s590_s23, %s590_s23 }
  0xfa   :  { %v422_v32 = vpack.c.bf16 %v414_v29, %v413_v31  ;;  %p730_p0 = scmp.ne.s32.totalorder %s590_s23, %s729_s24  ;;  %p735_p2 = scmp.lt.s32.totalorder %s729_s24, %s729_s24 }
  0xfb   :  { %v412_v30 = vsel %vm380_vm3, %v364_v26, %v396_v27 }
  0xfc   :  { %v421_v1 = vpack.c.bf16 %v412_v30, %v411_v28  ;;  %p736_p3 = por %p735_p2, %p734_p1 }
  0xfe   :  { %713 = vmatprep.mubr.msk.bf16.mxu0 %vm446_vm8, %v421_v1  ;;  %p737_p4 = pnand %p736_p3, %p730_p0 }
  0xff   :  { %714 = vmatmul.mubr.msk.bf16.gmra.mxu0 %vm446_vm8, %v422_v32 }
 0x1a7   :  { %v703_v33 = vpop.f32.mrf.mxu0 }
 0x1a8   :  { %v514_v34 = vadd.f32 %v703_v33, %v619_v8 }
 0x1a9   :  { %v505_v35 = vpop.f32.mrf.mxu0 }
 0x1aa   :  { %570 = vst [vmem:[#allocation2 + $0x10] sm:$0xff] %v514_v34  ;;  %v506_v36 = vadd.f32 %v619_v8, %v505_v35 }
 0x1ab   :  { %v704_v37 = vpop.f32.mrf.mxu0 }
 0x1ac   :  { %568 = vst [vmem:[#allocation2] sm:$0xff] %v506_v36  ;;  %v517_v38 = vadd.f32 %v704_v37, %v619_v8 }
 0x1ad   :  { %v508_v39 = vpop.f32.mrf.mxu0 }
 0x1ae   :  { %571 = vst [vmem:[#allocation2 + $0x18] sm:$0xff] %v517_v38  ;;  %v509_v40 = vadd.f32 %v619_v8, %v508_v39 }
 0x1af   :  { %v707_v41 = vpop.f32.mrf.mxu0 }
 0x1b0   :  { %569 = vst [vmem:[#allocation2 + $0x8] sm:$0xff] %v509_v40  ;;  %v530_v42 = vadd.f32 %v707_v41, %v619_v8 }
 0x1b1   :  { %v521_v43 = vpop.f32.mrf.mxu0 }
 0x1b2   :  { %574 = vst [vmem:[#allocation2 + $0x30] sm:$0xff] %v530_v42  ;;  %v522_v44 = vadd.f32 %v619_v8, %v521_v43 }
 0x1b3   :  { %v708_v45 = vpop.f32.mrf.mxu0 }
 0x1b4   :  { %572 = vst [vmem:[#allocation2 + $0x20] sm:$0xff] %v522_v44  ;;  %v533_v46 = vadd.f32 %v708_v45, %v619_v8 }
 0x1b5   :  { %v524_v47 = vpop.f32.mrf.mxu0 }
 0x1b6   :  { %575 = vst [vmem:[#allocation2 + $0x38] sm:$0xff] %v533_v46  ;;  %v525_v48 = vadd.f32 %v619_v8, %v524_v47 }
 0x1b7   :  { %v711_v49 = vpop.f32.mrf.mxu0 }
 0x1b8   :  { %573 = vst [vmem:[#allocation2 + $0x28] sm:$0xff] %v525_v48  ;;  %v546_v50 = vadd.f32 %v711_v49, %v619_v8 }
 0x1b9   :  { %v537_v51 = vpop.f32.mrf.mxu0 }
 0x1ba   :  { %578 = vst [vmem:[#allocation2 + $0x50] sm:$0xff] %v546_v50  ;;  %v538_v52 = vadd.f32 %v619_v8, %v537_v51 }
 0x1bb   :  { %v712_v53 = vpop.f32.mrf.mxu0 }
 0x1bc   :  { %576 = vst [vmem:[#allocation2 + $0x40] sm:$0xff] %v538_v52  ;;  %v549_v54 = vadd.f32 %v712_v53, %v619_v8 }
 0x1bd   :  { %v540_v58 = vpop.f32.mrf.mxu0 }
 0x1be   :  { %579 = vst [vmem:[#allocation2 + $0x58] sm:$0xff] %v549_v54  ;;  %v541_v60 = vadd.f32 %v619_v8, %v540_v58 }
 0x1bf   :  { %v715_v55 = vpop.f32.mrf.mxu0 }
 0x1c0   :  { %577 = vst [vmem:[#allocation2 + $0x48] sm:$0xff] %v541_v60  ;;  %v562_v63 = vadd.f32 %v715_v55, %v619_v8 }
 0x1c1   :  { %v553_v2 = vpop.f32.mrf.mxu0 }
 0x1c2   :  { %582 = vst [vmem:[#allocation2 + $0x70] sm:$0xff] %v562_v63  ;;  %v554_v56 = vadd.f32 %v619_v8, %v553_v2 }
 0x1c3   :  { %v716_v3 = vpop.f32.mrf.mxu0 }
 0x1c4   :  { %580 = vst [vmem:[#allocation2 + $0x60] sm:$0xff] %v554_v56  ;;  %v565_v4 = vadd.f32 %v716_v3, %v619_v8 }
 0x1c5   :  { %v556_v5 = vpop.f32.mrf.mxu0 }
 0x1c6   :  { %583 = vst [vmem:[#allocation2 + $0x78] sm:$0xff] %v565_v4  ;;  %v557_v6 = vadd.f32 %v619_v8, %v556_v5 }
 0x1c8   :  { %581 = vst [vmem:[#allocation2 + $0x68] sm:$0xff] %v557_v6 }
 0x1c9   :  { %740 = shalt.err (!%p737_p4)
}
 0x1ca   :  { %s752_s25 = smov 128   ;;  %s753_s2 = smov 8  }
 0x1cb   :  { %595 = dma.vmem_to_hbm [thread:$0]  %s590_s23, 2048, %s984_s7, [#allocation3], %s752_s25, %s752_s25, %s753_s2  }
 0x1cc   :  { %749 = dma.done.wait [#allocation3], 2048  }
 0x1cd   :  { %750 = vsyncadd [#allocation3], 4294965248 }
 0x1ce   :  { %599 = vsyncpa [#allocation3], 1 }

</bundles_post_ra>
